<compile_context>
chip_gen: v7x
topology: tpu7x:2x2x1
jax: 0.10.0
libtpu: 0.0.40
codegen_flags: <defaults>
</compile_context>

<pallas_src>
import functools

import numpy as np
import jax
import jax.numpy as jnp
from jax.experimental import pallas as pl
from jax.experimental.pallas import tpu as pltpu

_TM_CAP = 512  # max rows per grid step (mem-bound kernels ~85% of roofline at 512)


def _row_tiling(m, cap=_TM_CAP):
    """Pick (row_tile, padded_rows). Prefers a tile that divides m exactly (no
    pad / slice around the kernel) and, for large m, yields >= 2 grid steps so
    the 'parallel' row axis can feed both v7x TensorCores."""
    if m <= 256:
        return m, m                       # one full-extent block (always legal)
    target = min(cap, m // 2)
    for tm in (512, 256, 128, 64, 32, 16, 8):
        if tm <= target and m % tm == 0:
            return tm, m
    tm = min(cap, 256)                    # fallback (not hit by this network)
    return tm, tm * int(-(-m // tm))


def _pad_rows_to(x, mp, fill=0.0):
    m = x.shape[0]
    if mp == m:
        return x
    pad = ((0, mp - m),) + ((0, 0),) * (x.ndim - 1)
    return jnp.pad(x, pad, constant_values=fill)


# ----------------------------- Pallas kernels -------------------------------


def _matmul_kernel(a_ref, b_ref, bias_ref, o_ref, *, relu):
    y = jnp.dot(a_ref[...], b_ref[...],
                preferred_element_type=jnp.float32) + bias_ref[...]
    if relu:
        y = jnp.maximum(y, 0.0)
    o_ref[...] = y


def _matmul_res_relu_kernel(a_ref, b_ref, bias_ref, r_ref, o_ref):
    y = (jnp.dot(a_ref[...], b_ref[...], preferred_element_type=jnp.float32)
         + bias_ref[...] + r_ref[...])
    o_ref[...] = jnp.maximum(y, 0.0)


def _relu_kernel(x_ref, o_ref):
    o_ref[...] = jnp.maximum(x_ref[...], 0.0)


def _max_tree_kernel(*refs):
    *in_refs, o_ref = refs
    y = in_refs[0][...]
    for r in in_refs[1:]:
        y = jnp.maximum(y, r[...])
    o_ref[...] = y


def _gap_kernel(x_ref, o_ref):
    o_ref[...] = jnp.mean(x_ref[...], axis=1)


# ----------------------------- Pallas wrappers -------------------------------


def matmul_fused(a, b, bias=None, relu=False, residual=None):
    """(M,K)@(K,N) with fused per-column bias (+ residual) (+ ReLU) epilogue.

    A/B are fed to the MXU in bf16; accumulation and epilogue are f32."""
    m, k = a.shape
    _, n = b.shape
    if bias is None:
        bias = jnp.zeros((n,), jnp.float32)
    bias = bias.reshape(1, n).astype(jnp.float32)

    tm, mp = _row_tiling(m)
    a_p = _pad_rows_to(a.astype(jnp.float32), mp).astype(jnp.bfloat16)
    b_bf = b.astype(jnp.bfloat16)

    a_spec = pl.BlockSpec((tm, k), lambda i: (i, 0))
    b_spec = pl.BlockSpec((k, n), lambda i: (0, 0))
    bias_spec = pl.BlockSpec((1, n), lambda i: (0, 0))
    o_spec = pl.BlockSpec((tm, n), lambda i: (i, 0))

    if residual is None:
        kernel = functools.partial(_matmul_kernel, relu=relu)
        args = (a_p, b_bf, bias)
        in_specs = [a_spec, b_spec, bias_spec]
    else:
        r_p = _pad_rows_to(residual.astype(jnp.float32), mp)
        kernel = _matmul_res_relu_kernel
        args = (a_p, b_bf, bias, r_p)
        in_specs = [a_spec, b_spec, bias_spec,
                    pl.BlockSpec((tm, n), lambda i: (i, 0))]

    out = pl.pallas_call(
        kernel,
        grid=(mp // tm,),
        in_specs=in_specs,
        out_specs=o_spec,
        out_shape=jax.ShapeDtypeStruct((mp, n), jnp.float32),
        compiler_params=pltpu.CompilerParams(dimension_semantics=("parallel",)),
    )(*args)
    return out if mp == m else out[:m]


def relu_lane_dense(x):
    """ReLU on any tensor, reshaped so the lane dim is wide (>=128 if possible)
    to avoid masked partial stores."""
    shape = x.shape
    total = int(np.prod(shape))
    lane = 1024
    while lane > 1 and total % lane != 0:
        lane //= 2
    rows = total // lane
    x2 = x.reshape(rows, lane).astype(jnp.float32)
    tm, mp = _row_tiling(rows)
    x2p = _pad_rows_to(x2, mp)
    out = pl.pallas_call(
        _relu_kernel,
        grid=(mp // tm,),
        in_specs=[pl.BlockSpec((tm, lane), lambda i: (i, 0))],
        out_specs=pl.BlockSpec((tm, lane), lambda i: (i, 0)),
        out_shape=jax.ShapeDtypeStruct((mp, lane), jnp.float32),
        compiler_params=pltpu.CompilerParams(dimension_semantics=("parallel",)),
    )(x2p)
    out = out if mp == rows else out[:rows]
    return out.reshape(shape)


def maxpool3x3_s2_p1_nhwc(x):
    """3x3 / stride 2 / pad 1 maxpool: single 9-way max-tree kernel."""
    n, h, w, c = x.shape
    xp = jnp.pad(x, ((0, 0), (1, 1), (1, 1), (0, 0)), constant_values=-jnp.inf)
    ho = (h + 2 - 3) // 2 + 1
    wo = (w + 2 - 3) // 2 + 1
    m = n * ho * wo
    tm, mp = _row_tiling(m)
    slices = []
    for i in range(3):
        for j in range(3):
            s = xp[:, i:i + 2 * (ho - 1) + 1:2, j:j + 2 * (wo - 1) + 1:2, :]
            slices.append(_pad_rows_to(s.reshape(m, c), mp, fill=-jnp.inf))
    spec = pl.BlockSpec((tm, c), lambda i: (i, 0))
    out = pl.pallas_call(
        _max_tree_kernel,
        grid=(mp // tm,),
        in_specs=[spec] * 9,
        out_specs=pl.BlockSpec((tm, c), lambda i: (i, 0)),
        out_shape=jax.ShapeDtypeStruct((mp, c), jnp.float32),
        compiler_params=pltpu.CompilerParams(dimension_semantics=("parallel",)),
    )(*slices)
    out = out if mp == m else out[:m]
    return out.reshape(n, ho, wo, c)


def global_avg_pool(x_nhwc):
    """AdaptiveAvgPool2d((1,1)): (N, H, W, C) -> (N, C)."""
    n, h, w, c = x_nhwc.shape
    x3 = x_nhwc.reshape(n, h * w, c)
    return pl.pallas_call(
        _gap_kernel,
        grid=(1,),
        in_specs=[pl.BlockSpec((n, h * w, c), lambda i: (0, 0, 0))],
        out_specs=pl.BlockSpec((n, c), lambda i: (0, 0)),
        out_shape=jax.ShapeDtypeStruct((n, c), jnp.float32),
    )(x3)


# --------------------------- conv / layout helpers ----------------------------


def to_nhwc(x):
    return jnp.transpose(x, (0, 2, 3, 1))


def to_nchw(x):
    return jnp.transpose(x, (0, 3, 1, 2))


def conv_bn_nhwc(x, w, stride, padding, scale=None, shift=None,
                 relu=False, residual=None):
    """Conv2d (NHWC) with eval-mode BN folded into the weights, and bias /
    residual / ReLU fused into the matmul epilogue — one pallas_call total."""
    n, h, wd, cin = x.shape
    kh, kw, _, cout = w.shape
    if scale is not None:
        w = w * scale.reshape(1, 1, 1, cout)   # fold BN scale into the weights
        bias = shift                           # BN shift becomes the matmul bias
    else:
        bias = None
    ho = (h + 2 * padding - kh) // stride + 1
    wo = (wd + 2 * padding - kw) // stride + 1

    if kh == 1 and kw == 1 and padding == 0:
        xs = x if stride == 1 else x[:, ::stride, ::stride, :]
        a = xs.reshape(n * ho * wo, cin)       # 1x1 conv: no im2col expansion
    else:
        # TODO(synk): im2col is still plain-JAX HBM expansion; an in-kernel
        # gather over a kh*kw grid axis (strided index_map) would cut conv
        # input HBM traffic a further ~5-9x.
        xp = jnp.pad(x, ((0, 0), (padding, padding), (padding, padding), (0, 0)))
        cols = []
        for i in range(kh):
            for j in range(kw):
                cols.append(xp[:, i:i + stride * (ho - 1) + 1:stride,
                                  j:j + stride * (wo - 1) + 1:stride, :])
        a = jnp.concatenate(cols, axis=-1).reshape(n * ho * wo, kh * kw * cin)

    r = None if residual is None else residual.reshape(n * ho * wo, cout)
    out = matmul_fused(a, w.reshape(kh * kw * cin, cout),
                       bias=bias, relu=relu, residual=r)
    return out.reshape(n, ho, wo, cout)


def bottleneck_nhwc(x, p):
    """ResNet bottleneck: conv1x1 -> conv3x3 -> conv1x1 (+ residual, ReLU),
    each conv a single fused pallas_call (BN/ReLU/residual in the epilogue)."""
    identity = x
    out = conv_bn_nhwc(x, p["w1"], 1, 0, p["s1"], p["b1"], relu=True)
    out = conv_bn_nhwc(out, p["w2"], p["stride"], 1, p["s2"], p["b2"], relu=True)
    if "wd" in p:
        identity = conv_bn_nhwc(identity, p["wd"], p["stride"], 0,
                                p["sd"], p["bd"], relu=False)
    return conv_bn_nhwc(out, p["w3"], 1, 0, p["s3"], p["b3"],
                        relu=True, residual=identity)


# ------------------------------- the backbone --------------------------------


class TinyResNet:
    """Same top-level named children as torchvision.models.resnet101
    (conv1, bn1, relu, maxpool, layer1..layer4, avgpool, fc); widths / block
    counts are shrunk and weights are random (deterministic), since loading a
    pretrained checkpoint is out of scope for this synthetic kernel."""

    def __init__(self, key, num_classes=10):
        keys = iter(jax.random.split(key, 64))

        def conv_w(kh, kw, cin, cout):
            fan_in = kh * kw * cin
            return jax.random.normal(next(keys), (kh, kw, cin, cout),
                                     jnp.float32) / np.sqrt(fan_in)

        def bn_p(c):
            k1, k2, k3, k4 = jax.random.split(next(keys), 4)
            gamma = 1.0 + 0.1 * jax.random.normal(k1, (c,), jnp.float32)
            beta = 0.1 * jax.random.normal(k2, (c,), jnp.float32)
            mean = 0.1 * jax.random.normal(k3, (c,), jnp.float32)
            var = jax.random.uniform(k4, (c,), jnp.float32, 0.5, 1.5)
            scale = gamma / jnp.sqrt(var + 1e-5)   # eval-mode BN as an affine
            shift = beta - mean * scale
            return scale, shift

        stem = 8
        self.conv1_w = conv_w(7, 7, 3, stem)
        self.bn1 = bn_p(stem)

        def make_layer(cin, width, stride):
            # TODO(synk): resnet101 has (3,4,23,3) bottlenecks per layer; shrunk to 1.
            cout = width * 4
            p = {"stride": stride,
                 "w1": conv_w(1, 1, cin, width),
                 "w2": conv_w(3, 3, width, width),
                 "w3": conv_w(1, 1, width, cout)}
            p["s1"], p["b1"] = bn_p(width)
            p["s2"], p["b2"] = bn_p(width)
            p["s3"], p["b3"] = bn_p(cout)
            if stride != 1 or cin != cout:
                p["wd"] = conv_w(1, 1, cin, cout)
                p["sd"], p["bd"] = bn_p(cout)
            return p, cout

        self.layer1, c = make_layer(stem, 4, 1)
        self.layer2, c = make_layer(c, 8, 2)
        self.layer3, c = make_layer(c, 16, 2)
        self.layer4, c = make_layer(c, 32, 2)
        self.fc_w = jax.random.normal(next(keys), (c, num_classes),
                                      jnp.float32) / np.sqrt(c)
        self.fc_b = 0.1 * jax.random.normal(next(keys), (num_classes,), jnp.float32)

        # bn1 is folded into conv1's matmul epilogue (one less kernel + HBM
        # round trip); the value at the 'bn1' boundary is identical, only an
        # extracted 'conv1' output would differ (it would include BN).
        self._modules = {
            "conv1": lambda x: to_nchw(conv_bn_nhwc(to_nhwc(x), self.conv1_w, 2, 3,
                                                    self.bn1[0], self.bn1[1],
                                                    relu=False)),
            "bn1": lambda x: x,
            "relu": relu_lane_dense,
            "maxpool": lambda x: to_nchw(maxpool3x3_s2_p1_nhwc(to_nhwc(x))),
            "layer1": lambda x: to_nchw(bottleneck_nhwc(to_nhwc(x), self.layer1)),
            "layer2": lambda x: to_nchw(bottleneck_nhwc(to_nhwc(x), self.layer2)),
            "layer3": lambda x: to_nchw(bottleneck_nhwc(to_nhwc(x), self.layer3)),
            "layer4": lambda x: to_nchw(bottleneck_nhwc(to_nhwc(x), self.layer4)),
            "avgpool": self._avgpool_nchw,
            "fc": lambda x: matmul_fused(x, self.fc_w, bias=self.fc_b),
        }

    @staticmethod
    def _avgpool_nchw(x):
        y = global_avg_pool(to_nhwc(x))          # (N, C)
        return y.reshape(y.shape[0], y.shape[1], 1, 1)


# --------------------------- the FeatureExtractor -----------------------------


class FeatureExtractor:
    """Mirrors the PyTorch module: iterate named children, flatten before 'fc',
    collect outputs of the requested layers."""

    def __init__(self, submodule, extracted_layers):
        self.submodule = submodule
        self.extracted_layers = extracted_layers

    def __call__(self, x):
        outputs = []
        for name, module in self.submodule._modules.items():
            if name == "fc":
                x = x.reshape(x.shape[0], -1)
            x = module(x)
            if name in self.extracted_layers:
                outputs.append(x)
        return outputs


if __name__ == "__main__":
    key = jax.random.PRNGKey(0)
    k_params, k_x = jax.random.split(key)

    net = TinyResNet(k_params, num_classes=10)
    extractor = FeatureExtractor(net, ["relu", "layer1", "layer3", "fc"])

    x = jax.random.normal(k_x, (2, 3, 64, 64), jnp.float32)   # NCHW input
    outs = extractor(x)
    outs = jax.block_until_ready(outs)

    expected = [(2, 8, 32, 32), (2, 16, 16, 16), (2, 64, 4, 4), (2, 10)]
    got = [tuple(map(int, o.shape)) for o in outs]
    assert got == expected, got
    assert all(bool(jnp.all(jnp.isfinite(o))) for o in outs)

    print("KERNEL_OK")
</pallas_src>

<mosaic_0001>
module attributes {stable_mosaic.version = 11 : i64} {
  func.func @_matmul_kernel(%arg0: i32, %arg1: memref<512x147xbf16, #tpu.memory_space<vmem>>, %arg2: memref<147x8xbf16, #tpu.memory_space<vmem>>, %arg3: memref<1x8xf32, #tpu.memory_space<vmem>>, %arg4: memref<512x8xf32, #tpu.memory_space<vmem>>) attributes {dimension_semantics = [#tpu.dimension_semantics<parallel>], iteration_bounds = array<i64: 4>, scalar_prefetch = 0 : i64, scratch_operands = 0 : i64, tpu.core_type = #tpu.core_type<tc>, window_params = [{transform_indices = @transform_0, window_bounds = array<i64: 512, 147>}, {pipeline_mode = #tpu.pipeline_mode<synchronous>, transform_indices = @transform_1, window_bounds = array<i64: 147, 8>}, {pipeline_mode = #tpu.pipeline_mode<synchronous>, transform_indices = @transform_2, window_bounds = array<i64: 1, 8>}, {transform_indices = @transform_3, window_bounds = array<i64: 512, 8>}]} {
    %c0 = arith.constant 0 : index
    %c0_0 = arith.constant 0 : index
    %0 = vector.load %arg1[%c0, %c0_0] : memref<512x147xbf16, #tpu.memory_space<vmem>>, vector<512x147xbf16>
    %c0_1 = arith.constant 0 : index
    %c0_2 = arith.constant 0 : index
    %1 = vector.load %arg2[%c0_1, %c0_2] : memref<147x8xbf16, #tpu.memory_space<vmem>>, vector<147x8xbf16>
    %cst = arith.constant dense<0.000000e+00> : vector<512x8xf32>
    %2 = tpu.matmul %0, %1, %cst {dimension_numbers = #tpu.dot_dimension_numbers<[1], [0], [0], [1], [0, 0, 1, 1], [], []>} : vector<512x147xbf16>, vector<147x8xbf16>, vector<512x8xf32> -> vector<512x8xf32>
    %c0_3 = arith.constant 0 : index
    %c0_4 = arith.constant 0 : index
    %3 = vector.load %arg3[%c0_3, %c0_4] : memref<1x8xf32, #tpu.memory_space<vmem>>, vector<1x8xf32>
    %4 = vector.broadcast %3 : vector<1x8xf32> to vector<512x8xf32>
    %5 = arith.addf %2, %4 : vector<512x8xf32>
    %c0_5 = arith.constant 0 : index
    %c0_6 = arith.constant 0 : index
    %6 = vector.load %arg4[%c0_5, %c0_6] : memref<512x8xf32, #tpu.memory_space<vmem>>, vector<512x8xf32>
    tpu.vector_store %arg4[%c0_5, %c0_6], %5 {strides = array<i32>} : memref<512x8xf32, #tpu.memory_space<vmem>>, vector<512x8xf32>,
    return
  }
  func.func @transform_0(%arg0: i32) -> (i32, i32) {
    %c0_i32 = arith.constant 0 : i32
    %c0_i32_0 = arith.constant 0 : i32
    return %arg0, %c0_i32 : i32, i32
  }
  func.func @transform_1(%arg0: i32) -> (i32, i32) {
    %c0_i32 = arith.constant 0 : i32
    %c0_i32_0 = arith.constant 0 : i32
    %c0_i32_1 = arith.constant 0 : i32
    return %c0_i32, %c0_i32_0 : i32, i32
  }
  func.func @transform_2(%arg0: i32) -> (i32, i32) {
    %c0_i32 = arith.constant 0 : i32
    %c0_i32_0 = arith.constant 0 : i32
    %c0_i32_1 = arith.constant 0 : i32
    return %c0_i32, %c0_i32_0 : i32, i32
  }
  func.func @transform_3(%arg0: i32) -> (i32, i32) {
    %c0_i32 = arith.constant 0 : i32
    %c0_i32_0 = arith.constant 0 : i32
    return %arg0, %c0_i32 : i32, i32
  }
}

</mosaic_0001>

<bundles_post_ra>
// kernel: tpu_custom_call.1
= control target key start
LH: loop header
LB: loop body
LE: loop exit
PB: predicated region body
PF: predicated region fallthrough
CT: control target
= control target key end

     0   :  { %s1413_s12 = smov 0   ;;  %s1764_s0 = inlined_call_operand.vmem [shape: bf16[2048,147], index: 0, kind: input, shape index: {}]   ;;  %s1765_s1 = inlined_call_operand.vmem [shape: bf16[147,8], index: 1, kind: input, shape index: {}]   ;;  %s1766_s2 = inlined_call_operand.vmem [shape: f32[1,8], index: 2, kind: input, shape index: {}]   ;;  %s1767_s3 = inlined_call_operand.vmem [shape: f32[2048,8], index: 3, kind: output, shape index: {}]  }
   0x1 LB: > { %s1127_s13 = sadd.s32 4294967295, %s1389_s12   ;;  %p1131_p0 = scmp.ge.s32.totalorder %s1389_s12, 1  ;;  %s1389_s12 = sphi %s1413_s12, %s13_s12  }
   0x2   : > { %p139_p1 = scmp.lt.s32.totalorder %s1389_s12, 5 }
   0x4   : > { %p140_p2 = pnand %p1131_p0, %p139_p1 }
   0x5   : > { %v1277_v0 = vld [vmem:[%s1765_s1] sm:$0xff] (!%p140_p2)   ;;  %v1391_v1 = vmov (!%p140_p2), 0   ;;  %v1278_v2 = vld [vmem:[%s1765_s1 + $0x8] sm:$0xff] (!%p140_p2)   ;;  %v1279_v3 = vld [vmem:[%s1765_s1 + $0x10] sm:$0xff] (!%p140_p2)   ;;  %s1132_s20 = sshll.u32 (!%p140_p2), %s1127_s13, 6  ;;  %vm613_vm0 = vcmask (!%p140_p2), 154624  }
   0x6   : > { %143 = sbr.rel (%p140_p2) target bundleno = 383 (0x17f), region = 32  ;;  %717 = vmatprep.subr.bf16.mxu0 (!%p140_p2), %v1391_v1  ;;  %1247 = vmatprep.subr.bf16.mxu1 (!%p140_p2), %v1391_v1  ;;  %p165_p3 = scmp.lt.s32.totalorder (!%p140_p2), %s1132_s20, 255  ;;  %v1280_v4 = vld [vmem:[%s1765_s1 + $0x18] sm:$0xff] (!%p140_p2)   ;;  %v1281_v5 = vld [vmem:[%s1765_s1 + $0x20] sm:$0xff] (!%p140_p2)   ;;  %v1282_v8 = vld [vmem:[%s1765_s1 + $0x28] sm:$0xff] (!%p140_p2)   ;;  %vm710_vm1 = vcmask (!%p140_p2), 1040384  }
   0x7   : > { %718 = vmatpush1.bf16.msra.mxu0 (!%p140_p2), %v1277_v0  ;;  %1257 = vmatpush1.bf16.msra.mxu1 (!%p140_p2), %v1277_v0  ;;  %v1283_v9 = vld [vmem:[%s1765_s1 + $0x30] sm:$0xff] (!%p140_p2)   ;;  %v1284_v10 = vld [vmem:[%s1765_s1 + $0x38] sm:$0xff] (!%p140_p2)   ;;  %vm711_vm2 = vcmask (!%p140_p2), 1041408   ;;  %v1392_v11 = vmov (!%p140_p2), 65535   ;;  %v1285_v13 = vld [vmem:[%s1765_s1 + $0x40] sm:$0xff] (!%p140_p2)   ;;  %vm1006_vm3 = vcmask (!%p140_p2), 64512  }
   0x8   : > { %719 = vmatprep.subr.bf16.mxu0 (!%p140_p2), %v1391_v1  ;;  %1248 = vmatprep.subr.bf16.mxu1 (!%p140_p2), %v1391_v1  ;;  %v712_v12 = vsel (!%p140_p2), %vm710_vm1, 4294967295, %v1392_v11  ;;  %v1286_v14 = vld [vmem:[%s1765_s1 + $0x48] ss:$0 sps:$4 sm:$0x33] (!%p140_p2)  }
   0x9   : > { %v713_v15 = vsel (!%p140_p2), %vm711_vm2, %v712_v12, 0 }
   0xa   : > { %v715_v16 = vand.u32 (!%p140_p2), %v1286_v14, %v713_v15  ;;  %v1560_v15 = vld [vmem:[%s1766_s2] ss:$0 sm:$0xff] (!%p140_p2) }
   0xb   : > { %720 = vmatpush1.bf16.msra.mxu0 (!%p140_p2), %v1278_v2  ;;  %1258 = vmatpush1.bf16.msra.mxu1 (!%p140_p2), %v1278_v2 }
   0xc   : > { %721 = vmatprep.subr.bf16.mxu0 (!%p140_p2), %v1391_v1  ;;  %1249 = vmatprep.subr.bf16.mxu1 (!%p140_p2), %v1391_v1 }
   0xd   : > { %s1769_s20 = smov (!%p165_p3, %s1132_s20), 255 }
   0xe   : > { %s1246_s23 = sshll.u32 %s1769_s20, 3 }
   0xf   : > { %722 = vmatpush1.bf16.msra.mxu0 %v1279_v3  ;;  %1259 = vmatpush1.bf16.msra.mxu1 %v1279_v3  ;;  %s1441_s26 = scalar_lea.vmem %s1764_s0, %s1246_s23  ;;  %s1567_s17 = scalar_lea.vmem %s1767_s3, %s1246_s23 }
  0x10   : > { %723 = vmatprep.subr.bf16.mxu0 %v1391_v1  ;;  %1250 = vmatprep.subr.bf16.mxu1 %v1391_v1  ;;  %v1289_v6 = vld [vmem:[%s1441_s26 + $0x4] ss:$8 sps:$4 sm:$0xff]   ;;  %v1287_v17 = vld [vmem:[%s1441_s26] ss:$8 sps:$4 sm:$0xff]   ;;  %v1293_v19 = vld [vmem:[%s1441_s26 + $0x14] ss:$8 sps:$4 sm:$0xff]  }
  0x11   : > { %v1292_v7 = vld [vmem:[%s1441_s26 + $0x104] ss:$8 sps:$4 sm:$0xff]   ;;  %1212 = vmatprep.mubr.msk.bf16.mxu0 %vm613_vm0, %v1289_v6  ;;  %v1290_v18 = vld [vmem:[%s1441_s26 + $0x100] ss:$8 sps:$4 sm:$0xff]   ;;  %v1295_v20 = vld [vmem:[%s1441_s26 + $0x114] ss:$8 sps:$4 sm:$0xff]  }
  0x12   : > { %1228 = vmatprep.mubr.msk.bf16.mxu1 %vm613_vm0, %v1292_v7  ;;  %v1297_v21 = vld [vmem:[%s1441_s26 + $0x10] ss:$8 sps:$4 sm:$0xff]   ;;  %v1299_v23 = vld [vmem:[%s1441_s26 + $0x24] ss:$8 sps:$4 sm:$0xff]   ;;  %v1303_v25 = vld [vmem:[%s1441_s26 + $0x20] ss:$8 sps:$4 sm:$0xff]  }
  0x13   : > { %724 = vmatpush1.bf16.msra.mxu0 %v1280_v4  ;;  %1260 = vmatpush1.bf16.msra.mxu1 %v1280_v4  ;;  %v1298_v22 = vld [vmem:[%s1441_s26 + $0x110] ss:$8 sps:$4 sm:$0xff]   ;;  %v1301_v24 = vld [vmem:[%s1441_s26 + $0x124] ss:$8 sps:$4 sm:$0xff]   ;;  %v1304_v26 = vld [vmem:[%s1441_s26 + $0x120] ss:$8 sps:$4 sm:$0xff]  }
  0x14   : > { %725 = vmatprep.subr.bf16.mxu0 %v1391_v1  ;;  %1251 = vmatprep.subr.bf16.mxu1 %v1391_v1  ;;  %v1305_v27 = vld [vmem:[%s1441_s26 + $0x34] ss:$8 sps:$4 sm:$0xff]   ;;  %v1309_v29 = vld [vmem:[%s1441_s26 + $0x30] ss:$8 sps:$4 sm:$0xff]   ;;  %v1311_v31 = vld [vmem:[%s1441_s26 + $0x44] ss:$8 sps:$4 sm:$0xff]  }
  0x15   : > { %v1307_v28 = vld [vmem:[%s1441_s26 + $0x134] ss:$8 sps:$4 sm:$0xff]   ;;  %v1310_v30 = vld [vmem:[%s1441_s26 + $0x130] ss:$8 sps:$4 sm:$0xff]   ;;  %v1313_v32 = vld [vmem:[%s1441_s26 + $0x144] ss:$8 sps:$4 sm:$0xff]  }
  0x16   : > { %v1315_v33 = vld [vmem:[%s1441_s26 + $0x40] ss:$8 sps:$4 sm:$0xff]   ;;  %v1317_v35 = vld [vmem:[%s1441_s26 + $0x54] ss:$8 sps:$4 sm:$0xff]   ;;  %v1321_v37 = vld [vmem:[%s1441_s26 + $0x50] ss:$8 sps:$4 sm:$0xff]  }
  0x17   : > { %726 = vmatpush1.bf16.msra.mxu0 %v1281_v5  ;;  %1261 = vmatpush1.bf16.msra.mxu1 %v1281_v5  ;;  %v1316_v34 = vld [vmem:[%s1441_s26 + $0x140] ss:$8 sps:$4 sm:$0xff]   ;;  %v1319_v36 = vld [vmem:[%s1441_s26 + $0x154] ss:$8 sps:$4 sm:$0xff]   ;;  %v1322_v38 = vld [vmem:[%s1441_s26 + $0x150] ss:$8 sps:$4 sm:$0xff]  }
  0x18   : > { %727 = vmatprep.subr.bf16.mxu0 %v1391_v1  ;;  %1252 = vmatprep.subr.bf16.mxu1 %v1391_v1  ;;  %v1323_v39 = vld [vmem:[%s1441_s26 + $0x64] ss:$8 sps:$4 sm:$0xff]   ;;  %v1327_v41 = vld [vmem:[%s1441_s26 + $0x60] ss:$8 sps:$4 sm:$0xff]   ;;  %v1329_v43 = vld [vmem:[%s1441_s26 + $0x74] ss:$8 sps:$4 sm:$0xff]  }
  0x19   : > { %v1325_v40 = vld [vmem:[%s1441_s26 + $0x164] ss:$8 sps:$4 sm:$0xff]   ;;  %v1328_v42 = vld [vmem:[%s1441_s26 + $0x160] ss:$8 sps:$4 sm:$0xff]   ;;  %v1331_v44 = vld [vmem:[%s1441_s26 + $0x174] ss:$8 sps:$4 sm:$0xff]  }
  0x1a   : > { %v1333_v45 = vld [vmem:[%s1441_s26 + $0x70] ss:$8 sps:$4 sm:$0xff]   ;;  %v1335_v47 = vld [vmem:[%s1441_s26 + $0x84] ss:$8 sps:$4 sm:$0xff]   ;;  %v1339_v49 = vld [vmem:[%s1441_s26 + $0x80] ss:$8 sps:$4 sm:$0xff]  }
  0x1b   : > { %728 = vmatpush1.bf16.msra.mxu0 %v1282_v8  ;;  %1262 = vmatpush1.bf16.msra.mxu1 %v1282_v8  ;;  %v1334_v46 = vld [vmem:[%s1441_s26 + $0x170] ss:$8 sps:$4 sm:$0xff]   ;;  %v1337_v48 = vld [vmem:[%s1441_s26 + $0x184] ss:$8 sps:$4 sm:$0xff]   ;;  %v1340_v50 = vld [vmem:[%s1441_s26 + $0x180] ss:$8 sps:$4 sm:$0xff]  }
  0x1c   : > { %729 = vmatprep.subr.bf16.mxu0 %v1391_v1  ;;  %1253 = vmatprep.subr.bf16.mxu1 %v1391_v1  ;;  %v1341_v51 = vld [vmem:[%s1441_s26 + $0x94] ss:$8 sps:$4 sm:$0xff]   ;;  %v1345_v53 = vld [vmem:[%s1441_s26 + $0x90] ss:$8 sps:$4 sm:$0xff]   ;;  %v1347_v55 = vld [vmem:[%s1441_s26 + $0xa4] ss:$8 sps:$4 sm:$0xff]  }
  0x1d   : > { %v1343_v52 = vld [vmem:[%s1441_s26 + $0x194] ss:$8 sps:$4 sm:$0xff]   ;;  %v1346_v54 = vld [vmem:[%s1441_s26 + $0x190] ss:$8 sps:$4 sm:$0xff]   ;;  %v1349_v56 = vld [vmem:[%s1441_s26 + $0x1a4] ss:$8 sps:$4 sm:$0xff]  }
  0x1e   : > { %v1351_v57 = vld [vmem:[%s1441_s26 + $0xa0] ss:$8 sps:$4 sm:$0xff]   ;;  %v1353_v59 = vld [vmem:[%s1441_s26 + $0xb4] ss:$8 sps:$4 sm:$0xff]   ;;  %v1357_v61 = vld [vmem:[%s1441_s26 + $0xb0] ss:$8 sps:$4 sm:$0xff]  }
  0x1f   : > { %730 = vmatpush1.bf16.msra.mxu0 %v1283_v9  ;;  %1263 = vmatpush1.bf16.msra.mxu1 %v1283_v9  ;;  %v1352_v58 = vld [vmem:[%s1441_s26 + $0x1a0] ss:$8 sps:$4 sm:$0xff]   ;;  %v1355_v60 = vld [vmem:[%s1441_s26 + $0x1b4] ss:$8 sps:$4 sm:$0xff]   ;;  %v1358_v62 = vld [vmem:[%s1441_s26 + $0x1b0] ss:$8 sps:$4 sm:$0xff]  }
  0x20   : > { %731 = vmatprep.subr.bf16.mxu0 %v1391_v1  ;;  %1254 = vmatprep.subr.bf16.mxu1 %v1391_v1  ;;  %v1359_v63 = vld [vmem:[%s1441_s26 + $0xc4] ss:$8 sps:$4 sm:$0xff]   ;;  %v1364_v2 = vld [vmem:[%s1441_s26 + $0x1c0] ss:$8 sps:$4 sm:$0xff]   ;;  %v1365_v3 = vld [vmem:[%s1441_s26 + $0xd4] ss:$8 sps:$4 sm:$0xff]  }
  0x21   : > { %v1361_v0 = vld [vmem:[%s1441_s26 + $0x1c4] ss:$8 sps:$4 sm:$0xff]   ;;  %v1367_v4 = vld [vmem:[%s1441_s26 + $0x1d4] ss:$8 sps:$4 sm:$0xff]   ;;  %v1369_v5 = vld [vmem:[%s1441_s26 + $0xd0] ss:$8 sps:$4 sm:$0xff]  }
  0x22   : > { %v1370_v6 = vld [vmem:[%s1441_s26 + $0x1d0] ss:$8 sps:$4 sm:$0xff]   ;;  %v1371_v7 = vld [vmem:[%s1441_s26 + $0xe4] ss:$8 sps:$4 sm:$0xff]   ;;  %v1375_v9 = vld [vmem:[%s1441_s26 + $0xe0] ss:$8 sps:$4 sm:$0xff]  }
  0x23   : > { %732 = vmatpush1.bf16.msra.mxu0 %v1284_v10  ;;  %1264 = vmatpush1.bf16.msra.mxu1 %v1284_v10  ;;  %v1373_v8 = vld [vmem:[%s1441_s26 + $0x1e4] ss:$8 sps:$4 sm:$0xff]   ;;  %v1376_v10 = vld [vmem:[%s1441_s26 + $0x1e0] ss:$8 sps:$4 sm:$0xff]   ;;  %v1377_v11 = vld [vmem:[%s1441_s26 + $0xf4] ss:$8 sps:$4 sm:$0xff]  }
  0x24   : > { %733 = vmatprep.subr.bf16.mxu0 %v1391_v1  ;;  %1255 = vmatprep.subr.bf16.mxu1 %v1391_v1  ;;  %v1379_v12 = vld [vmem:[%s1441_s26 + $0x1f4] ss:$8 sps:$4 sm:$0xff]   ;;  %v1382_v14 = vld [vmem:[%s1441_s26 + $0x1f0] ss:$8 sps:$4 sm:$0xff]  }
  0x27   : > { %734 = vmatpush1.bf16.msra.mxu0 %v1285_v13  ;;  %1265 = vmatpush1.bf16.msra.mxu1 %v1285_v13  ;;  %v1381_v13 = vld [vmem:[%s1441_s26 + $0xf0] ss:$8 sps:$4 sm:$0xff]  }
  0x28   : > { %735 = vmatprep.subr.bf16.mxu0 %v1391_v1  ;;  %1256 = vmatprep.subr.bf16.mxu1 %v1391_v1  ;;  %v1363_v1 = vld [vmem:[%s1441_s26 + $0xc0] ss:$8 sps:$4 sm:$0xff]  }
  0x2b   : > { %736 = vmatpush1.bf16.msra.mxu0 %v715_v16  ;;  %1266 = vmatpush1.bf16.msra.mxu1 %v715_v16 }
  0x2e   : > { %750 = vmatmul.mubr.bf16.vlgmr.msra.gmra.mrb[0].mxu0 %v1287_v17  ;;  %878 = vmatmul.mubr.bf16.vlgmr.msra.gmra.mrb[0].mxu1 %v1290_v18 }
  0x2f   : > { %1213 = vmatprep.mubr.msk.bf16.mxu0 %vm613_vm0, %v1293_v19  ;;  %1229 = vmatprep.mubr.msk.bf16.mxu1 %vm613_vm0, %v1295_v20 }
  0x36   : > { %758 = vmatmul.mubr.bf16.gmra.mrb[4].mxu0 %v1297_v21  ;;  %886 = vmatmul.mubr.bf16.gmra.mrb[4].mxu1 %v1298_v22 }
  0x37   : > { %1214 = vmatprep.mubr.msk.bf16.mxu0 %vm613_vm0, %v1299_v23  ;;  %1230 = vmatprep.mubr.msk.bf16.mxu1 %vm613_vm0, %v1301_v24 }
  0x3e   : > { %766 = vmatmul.mubr.bf16.gmra.mrb[8].mxu0 %v1303_v25  ;;  %894 = vmatmul.mubr.bf16.gmra.mrb[8].mxu1 %v1304_v26 }
  0x3f   : > { %1215 = vmatprep.mubr.msk.bf16.mxu0 %vm613_vm0, %v1305_v27  ;;  %1231 = vmatprep.mubr.msk.bf16.mxu1 %vm613_vm0, %v1307_v28 }
  0x46   : > { %774 = vmatmul.mubr.bf16.gmra.mrb[12].mxu0 %v1309_v29  ;;  %902 = vmatmul.mubr.bf16.gmra.mrb[12].mxu1 %v1310_v30 }
  0x47   : > { %1216 = vmatprep.mubr.msk.bf16.mxu0 %vm613_vm0, %v1311_v31  ;;  %1232 = vmatprep.mubr.msk.bf16.mxu1 %vm613_vm0, %v1313_v32 }
  0x4e   : > { %782 = vmatmul.mubr.bf16.gmra.mrb[16].mxu0 %v1315_v33  ;;  %910 = vmatmul.mubr.bf16.gmra.mrb[16].mxu1 %v1316_v34 }
  0x4f   : > { %1217 = vmatprep.mubr.msk.bf16.mxu0 %vm613_vm0, %v1317_v35  ;;  %1233 = vmatprep.mubr.msk.bf16.mxu1 %vm613_vm0, %v1319_v36 }
  0x56   : > { %790 = vmatmul.mubr.bf16.gmra.mrb[20].mxu0 %v1321_v37  ;;  %918 = vmatmul.mubr.bf16.gmra.mrb[20].mxu1 %v1322_v38 }
  0x57   : > { %1218 = vmatprep.mubr.msk.bf16.mxu0 %vm613_vm0, %v1323_v39  ;;  %1234 = vmatprep.mubr.msk.bf16.mxu1 %vm613_vm0, %v1325_v40 }
  0x5e   : > { %798 = vmatmul.mubr.bf16.gmra.mrb[24].mxu0 %v1327_v41  ;;  %926 = vmatmul.mubr.bf16.gmra.mrb[24].mxu1 %v1328_v42 }
  0x5f   : > { %1219 = vmatprep.mubr.msk.bf16.mxu0 %vm613_vm0, %v1329_v43  ;;  %1235 = vmatprep.mubr.msk.bf16.mxu1 %vm613_vm0, %v1331_v44 }
  0x66   : > { %806 = vmatmul.mubr.bf16.gmra.mrb[28].mxu0 %v1333_v45  ;;  %934 = vmatmul.mubr.bf16.gmra.mrb[28].mxu1 %v1334_v46 }
  0x67   : > { %1220 = vmatprep.mubr.msk.bf16.mxu0 %vm613_vm0, %v1335_v47  ;;  %1236 = vmatprep.mubr.msk.bf16.mxu1 %vm613_vm0, %v1337_v48 }
  0x6e   : > { %814 = vmatmul.mubr.bf16.gmra.mrb[32].mxu0 %v1339_v49  ;;  %942 = vmatmul.mubr.bf16.gmra.mrb[32].mxu1 %v1340_v50 }
  0x6f   : > { %1221 = vmatprep.mubr.msk.bf16.mxu0 %vm613_vm0, %v1341_v51  ;;  %1237 = vmatprep.mubr.msk.bf16.mxu1 %vm613_vm0, %v1343_v52 }
  0x76   : > { %822 = vmatmul.mubr.bf16.gmra.mrb[36].mxu0 %v1345_v53  ;;  %950 = vmatmul.mubr.bf16.gmra.mrb[36].mxu1 %v1346_v54 }
  0x77   : > { %1222 = vmatprep.mubr.msk.bf16.mxu0 %vm613_vm0, %v1347_v55  ;;  %1238 = vmatprep.mubr.msk.bf16.mxu1 %vm613_vm0, %v1349_v56 }
  0x7e   : > { %830 = vmatmul.mubr.bf16.gmra.mrb[40].mxu0 %v1351_v57  ;;  %958 = vmatmul.mubr.bf16.gmra.mrb[40].mxu1 %v1352_v58 }
  0x7f   : > { %1223 = vmatprep.mubr.msk.bf16.mxu0 %vm613_vm0, %v1353_v59  ;;  %1239 = vmatprep.mubr.msk.bf16.mxu1 %vm613_vm0, %v1355_v60 }
  0x86   : > { %838 = vmatmul.mubr.bf16.gmra.mrb[44].mxu0 %v1357_v61  ;;  %966 = vmatmul.mubr.bf16.gmra.mrb[44].mxu1 %v1358_v62 }
  0x87   : > { %1224 = vmatprep.mubr.msk.bf16.mxu0 %vm613_vm0, %v1359_v63  ;;  %1240 = vmatprep.mubr.msk.bf16.mxu1 %vm613_vm0, %v1361_v0 }
  0x8e   : > { %846 = vmatmul.mubr.bf16.gmra.mrb[48].mxu0 %v1363_v1  ;;  %974 = vmatmul.mubr.bf16.gmra.mrb[48].mxu1 %v1364_v2 }
  0x8f   : > { %1225 = vmatprep.mubr.msk.bf16.mxu0 %vm613_vm0, %v1365_v3  ;;  %1241 = vmatprep.mubr.msk.bf16.mxu1 %vm613_vm0, %v1367_v4 }
  0x96   : > { %854 = vmatmul.mubr.bf16.gmra.mrb[52].mxu0 %v1369_v5  ;;  %982 = vmatmul.mubr.bf16.gmra.mrb[52].mxu1 %v1370_v6 }
  0x97   : > { %1226 = vmatprep.mubr.msk.bf16.mxu0 %vm613_vm0, %v1371_v7  ;;  %1242 = vmatprep.mubr.msk.bf16.mxu1 %vm613_vm0, %v1373_v8 }
  0x9e   : > { %862 = vmatmul.mubr.bf16.gmra.mrb[56].mxu0 %v1375_v9  ;;  %990 = vmatmul.mubr.bf16.gmra.mrb[56].mxu1 %v1376_v10 }
  0x9f   : > { %1227 = vmatprep.mubr.msk.bf16.mxu0 %vm613_vm0, %v1377_v11  ;;  %1243 = vmatprep.mubr.msk.bf16.mxu1 %vm613_vm0, %v1379_v12 }
  0xa6   : > { %870 = vmatmul.mubr.bf16.gmra.mrb[60].mxu0 %v1381_v13  ;;  %998 = vmatmul.mubr.bf16.gmra.mrb[60].mxu1 %v1382_v14 }
 0x101   : > { %v751_v16 = vpop.f32.mrb[0].mxu0  ;;  %v879_v17 = vpop.f32.mrb[0].mxu1 }
 0x102   : > { %v752_v18 = vadd.f32 %v1560_v15, %v751_v16  ;;  %v880_v19 = vadd.f32 %v1560_v15, %v879_v17  ;;  %v753_v20 = vpop.f32.mrb[1].mxu0  ;;  %v881_v21 = vpop.f32.mrb[1].mxu1 }
 0x103   : > { %v754_v22 = vpop.f32.mrb[2].mxu0  ;;  %v882_v23 = vpop.f32.mrb[2].mxu1 }
 0x104   : > { %1007 = vst.msk [vmem:[%s1567_s17] sm:$0xff] %vm1006_vm3, %v752_v18  ;;  %1039 = vst.msk [vmem:[%s1567_s17 + $0x100] sm:$0xff] %vm1006_vm3, %v880_v19  ;;  %v755_v24 = vadd.f32 %v1560_v15, %v754_v22  ;;  %v883_v25 = vadd.f32 %v1560_v15, %v882_v23  ;;  %v756_v26 = vpop.f32.mrb[3].mxu0  ;;  %v884_v27 = vpop.f32.mrb[3].mxu1 }
 0x106   : > { %1008 = vst.msk [vmem:[%s1567_s17 + $0x8] sm:$0xff] %vm1006_vm3, %v755_v24  ;;  %1040 = vst.msk [vmem:[%s1567_s17 + $0x108] sm:$0xff] %vm1006_vm3, %v883_v25 }
 0x109   : > { %v759_v28 = vpop.f32.mrb[4].mxu0  ;;  %v887_v29 = vpop.f32.mrb[4].mxu1 }
 0x10a   : > { %v760_v30 = vadd.f32 %v1560_v15, %v759_v28  ;;  %v888_v31 = vadd.f32 %v1560_v15, %v887_v29  ;;  %v761_v32 = vpop.f32.mrb[5].mxu0  ;;  %v889_v33 = vpop.f32.mrb[5].mxu1 }
 0x10b   : > { %v762_v34 = vpop.f32.mrb[6].mxu0  ;;  %v890_v35 = vpop.f32.mrb[6].mxu1 }
 0x10c   : > { %1009 = vst.msk [vmem:[%s1567_s17 + $0x10] sm:$0xff] %vm1006_vm3, %v760_v30  ;;  %1041 = vst.msk [vmem:[%s1567_s17 + $0x110] sm:$0xff] %vm1006_vm3, %v888_v31  ;;  %v763_v36 = vadd.f32 %v1560_v15, %v762_v34  ;;  %v891_v37 = vadd.f32 %v1560_v15, %v890_v35  ;;  %v764_v38 = vpop.f32.mrb[7].mxu0  ;;  %v892_v39 = vpop.f32.mrb[7].mxu1 }
 0x10e   : > { %1010 = vst.msk [vmem:[%s1567_s17 + $0x18] sm:$0xff] %vm1006_vm3, %v763_v36  ;;  %1042 = vst.msk [vmem:[%s1567_s17 + $0x118] sm:$0xff] %vm1006_vm3, %v891_v37 }
 0x111   : > { %v767_v40 = vpop.f32.mrb[8].mxu0  ;;  %v895_v41 = vpop.f32.mrb[8].mxu1 }
 0x112   : > { %v768_v42 = vadd.f32 %v1560_v15, %v767_v40  ;;  %v896_v43 = vadd.f32 %v1560_v15, %v895_v41  ;;  %v769_v44 = vpop.f32.mrb[9].mxu0  ;;  %v897_v45 = vpop.f32.mrb[9].mxu1 }
 0x113   : > { %v770_v46 = vpop.f32.mrb[10].mxu0  ;;  %v898_v47 = vpop.f32.mrb[10].mxu1 }
 0x114   : > { %1011 = vst.msk [vmem:[%s1567_s17 + $0x20] sm:$0xff] %vm1006_vm3, %v768_v42  ;;  %1043 = vst.msk [vmem:[%s1567_s17 + $0x120] sm:$0xff] %vm1006_vm3, %v896_v43  ;;  %v771_v48 = vadd.f32 %v1560_v15, %v770_v46  ;;  %v899_v49 = vadd.f32 %v1560_v15, %v898_v47  ;;  %v772_v50 = vpop.f32.mrb[11].mxu0  ;;  %v900_v51 = vpop.f32.mrb[11].mxu1 }
 0x116   : > { %1012 = vst.msk [vmem:[%s1567_s17 + $0x28] sm:$0xff] %vm1006_vm3, %v771_v48  ;;  %1044 = vst.msk [vmem:[%s1567_s17 + $0x128] sm:$0xff] %vm1006_vm3, %v899_v49 }
 0x119   : > { %v775_v52 = vpop.f32.mrb[12].mxu0  ;;  %v903_v53 = vpop.f32.mrb[12].mxu1 }
 0x11a   : > { %v776_v54 = vadd.f32 %v1560_v15, %v775_v52  ;;  %v904_v55 = vadd.f32 %v1560_v15, %v903_v53  ;;  %v777_v56 = vpop.f32.mrb[13].mxu0  ;;  %v905_v57 = vpop.f32.mrb[13].mxu1 }
 0x11b   : > { %v778_v58 = vpop.f32.mrb[14].mxu0  ;;  %v906_v59 = vpop.f32.mrb[14].mxu1 }
 0x11c   : > { %1013 = vst.msk [vmem:[%s1567_s17 + $0x30] sm:$0xff] %vm1006_vm3, %v776_v54  ;;  %1045 = vst.msk [vmem:[%s1567_s17 + $0x130] sm:$0xff] %vm1006_vm3, %v904_v55  ;;  %v779_v60 = vadd.f32 %v1560_v15, %v778_v58  ;;  %v907_v61 = vadd.f32 %v1560_v15, %v906_v59  ;;  %v780_v62 = vpop.f32.mrb[15].mxu0  ;;  %v908_v63 = vpop.f32.mrb[15].mxu1 }
 0x11e   : > { %1014 = vst.msk [vmem:[%s1567_s17 + $0x38] sm:$0xff] %vm1006_vm3, %v779_v60  ;;  %1046 = vst.msk [vmem:[%s1567_s17 + $0x138] sm:$0xff] %vm1006_vm3, %v907_v61 }
 0x121   : > { %v783_v0 = vpop.f32.mrb[16].mxu0  ;;  %v911_v1 = vpop.f32.mrb[16].mxu1 }
 0x122   : > { %v784_v2 = vadd.f32 %v1560_v15, %v783_v0  ;;  %v912_v3 = vadd.f32 %v1560_v15, %v911_v1  ;;  %v785_v4 = vpop.f32.mrb[17].mxu0  ;;  %v913_v5 = vpop.f32.mrb[17].mxu1 }
 0x123   : > { %v786_v6 = vpop.f32.mrb[18].mxu0  ;;  %v914_v7 = vpop.f32.mrb[18].mxu1 }
 0x124   : > { %1015 = vst.msk [vmem:[%s1567_s17 + $0x40] sm:$0xff] %vm1006_vm3, %v784_v2  ;;  %1047 = vst.msk [vmem:[%s1567_s17 + $0x140] sm:$0xff] %vm1006_vm3, %v912_v3  ;;  %v787_v8 = vadd.f32 %v1560_v15, %v786_v6  ;;  %v915_v9 = vadd.f32 %v1560_v15, %v914_v7  ;;  %v788_v10 = vpop.f32.mrb[19].mxu0  ;;  %v916_v11 = vpop.f32.mrb[19].mxu1 }
 0x126   : > { %1016 = vst.msk [vmem:[%s1567_s17 + $0x48] sm:$0xff] %vm1006_vm3, %v787_v8  ;;  %1048 = vst.msk [vmem:[%s1567_s17 + $0x148] sm:$0xff] %vm1006_vm3, %v915_v9 }
 0x129   : > { %v791_v12 = vpop.f32.mrb[20].mxu0  ;;  %v919_v13 = vpop.f32.mrb[20].mxu1 }
 0x12a   : > { %v792_v14 = vadd.f32 %v1560_v15, %v791_v12  ;;  %v920_v16 = vadd.f32 %v1560_v15, %v919_v13  ;;  %v793_v17 = vpop.f32.mrb[21].mxu0  ;;  %v921_v18 = vpop.f32.mrb[21].mxu1 }
 0x12b   : > { %v794_v19 = vpop.f32.mrb[22].mxu0  ;;  %v922_v20 = vpop.f32.mrb[22].mxu1 }
 0x12c   : > { %1017 = vst.msk [vmem:[%s1567_s17 + $0x50] sm:$0xff] %vm1006_vm3, %v792_v14  ;;  %1049 = vst.msk [vmem:[%s1567_s17 + $0x150] sm:$0xff] %vm1006_vm3, %v920_v16  ;;  %v795_v21 = vadd.f32 %v1560_v15, %v794_v19  ;;  %v923_v22 = vadd.f32 %v1560_v15, %v922_v20  ;;  %v796_v23 = vpop.f32.mrb[23].mxu0  ;;  %v924_v24 = vpop.f32.mrb[23].mxu1 }
 0x12e   : > { %1018 = vst.msk [vmem:[%s1567_s17 + $0x58] sm:$0xff] %vm1006_vm3, %v795_v21  ;;  %1050 = vst.msk [vmem:[%s1567_s17 + $0x158] sm:$0xff] %vm1006_vm3, %v923_v22 }
 0x131   : > { %v799_v25 = vpop.f32.mrb[24].mxu0  ;;  %v927_v26 = vpop.f32.mrb[24].mxu1 }
 0x132   : > { %v800_v27 = vadd.f32 %v1560_v15, %v799_v25  ;;  %v928_v28 = vadd.f32 %v1560_v15, %v927_v26  ;;  %v801_v29 = vpop.f32.mrb[25].mxu0  ;;  %v929_v30 = vpop.f32.mrb[25].mxu1 }
 0x133   : > { %v802_v31 = vpop.f32.mrb[26].mxu0  ;;  %v930_v32 = vpop.f32.mrb[26].mxu1 }
 0x134   : > { %1019 = vst.msk [vmem:[%s1567_s17 + $0x60] sm:$0xff] %vm1006_vm3, %v800_v27  ;;  %1051 = vst.msk [vmem:[%s1567_s17 + $0x160] sm:$0xff] %vm1006_vm3, %v928_v28  ;;  %v803_v33 = vadd.f32 %v1560_v15, %v802_v31  ;;  %v931_v34 = vadd.f32 %v1560_v15, %v930_v32  ;;  %v804_v35 = vpop.f32.mrb[27].mxu0  ;;  %v932_v36 = vpop.f32.mrb[27].mxu1 }
 0x136   : > { %1020 = vst.msk [vmem:[%s1567_s17 + $0x68] sm:$0xff] %vm1006_vm3, %v803_v33  ;;  %1052 = vst.msk [vmem:[%s1567_s17 + $0x168] sm:$0xff] %vm1006_vm3, %v931_v34 }
 0x139   : > { %v807_v37 = vpop.f32.mrb[28].mxu0  ;;  %v935_v38 = vpop.f32.mrb[28].mxu1 }
 0x13a   : > { %v808_v39 = vadd.f32 %v1560_v15, %v807_v37  ;;  %v936_v40 = vadd.f32 %v1560_v15, %v935_v38  ;;  %v809_v41 = vpop.f32.mrb[29].mxu0  ;;  %v937_v42 = vpop.f32.mrb[29].mxu1 }
 0x13b   : > { %v810_v43 = vpop.f32.mrb[30].mxu0  ;;  %v938_v44 = vpop.f32.mrb[30].mxu1 }
 0x13c   : > { %1021 = vst.msk [vmem:[%s1567_s17 + $0x70] sm:$0xff] %vm1006_vm3, %v808_v39  ;;  %1053 = vst.msk [vmem:[%s1567_s17 + $0x170] sm:$0xff] %vm1006_vm3, %v936_v40  ;;  %v811_v45 = vadd.f32 %v1560_v15, %v810_v43  ;;  %v939_v46 = vadd.f32 %v1560_v15, %v938_v44  ;;  %v812_v47 = vpop.f32.mrb[31].mxu0  ;;  %v940_v48 = vpop.f32.mrb[31].mxu1 }
 0x13e   : > { %1022 = vst.msk [vmem:[%s1567_s17 + $0x78] sm:$0xff] %vm1006_vm3, %v811_v45  ;;  %1054 = vst.msk [vmem:[%s1567_s17 + $0x178] sm:$0xff] %vm1006_vm3, %v939_v46 }
 0x141   : > { %v815_v49 = vpop.f32.mrb[32].mxu0  ;;  %v943_v50 = vpop.f32.mrb[32].mxu1 }
 0x142   : > { %v816_v51 = vadd.f32 %v1560_v15, %v815_v49  ;;  %v944_v52 = vadd.f32 %v1560_v15, %v943_v50  ;;  %v817_v53 = vpop.f32.mrb[33].mxu0  ;;  %v945_v54 = vpop.f32.mrb[33].mxu1 }
 0x143   : > { %v818_v55 = vpop.f32.mrb[34].mxu0  ;;  %v946_v56 = vpop.f32.mrb[34].mxu1 }
 0x144   : > { %1023 = vst.msk [vmem:[%s1567_s17 + $0x80] sm:$0xff] %vm1006_vm3, %v816_v51  ;;  %1055 = vst.msk [vmem:[%s1567_s17 + $0x180] sm:$0xff] %vm1006_vm3, %v944_v52  ;;  %v819_v57 = vadd.f32 %v1560_v15, %v818_v55  ;;  %v947_v58 = vadd.f32 %v1560_v15, %v946_v56  ;;  %v820_v59 = vpop.f32.mrb[35].mxu0  ;;  %v948_v60 = vpop.f32.mrb[35].mxu1 }
 0x146   : > { %1024 = vst.msk [vmem:[%s1567_s17 + $0x88] sm:$0xff] %vm1006_vm3, %v819_v57  ;;  %1056 = vst.msk [vmem:[%s1567_s17 + $0x188] sm:$0xff] %vm1006_vm3, %v947_v58 }
 0x149   : > { %v823_v61 = vpop.f32.mrb[36].mxu0  ;;  %v951_v62 = vpop.f32.mrb[36].mxu1 }
 0x14a   : > { %v824_v63 = vadd.f32 %v1560_v15, %v823_v61  ;;  %v952_v0 = vadd.f32 %v1560_v15, %v951_v62  ;;  %v825_v1 = vpop.f32.mrb[37].mxu0  ;;  %v953_v2 = vpop.f32.mrb[37].mxu1 }
 0x14b   : > { %v826_v3 = vpop.f32.mrb[38].mxu0  ;;  %v954_v4 = vpop.f32.mrb[38].mxu1 }
 0x14c   : > { %1025 = vst.msk [vmem:[%s1567_s17 + $0x90] sm:$0xff] %vm1006_vm3, %v824_v63  ;;  %1057 = vst.msk [vmem:[%s1567_s17 + $0x190] sm:$0xff] %vm1006_vm3, %v952_v0  ;;  %v827_v5 = vadd.f32 %v1560_v15, %v826_v3  ;;  %v955_v6 = vadd.f32 %v1560_v15, %v954_v4  ;;  %v828_v7 = vpop.f32.mrb[39].mxu0  ;;  %v956_v8 = vpop.f32.mrb[39].mxu1 }
 0x14e   : > { %1026 = vst.msk [vmem:[%s1567_s17 + $0x98] sm:$0xff] %vm1006_vm3, %v827_v5  ;;  %1058 = vst.msk [vmem:[%s1567_s17 + $0x198] sm:$0xff] %vm1006_vm3, %v955_v6 }
 0x151   : > { %v831_v9 = vpop.f32.mrb[40].mxu0  ;;  %v959_v10 = vpop.f32.mrb[40].mxu1 }
 0x152   : > { %v832_v11 = vadd.f32 %v1560_v15, %v831_v9  ;;  %v960_v12 = vadd.f32 %v1560_v15, %v959_v10  ;;  %v833_v13 = vpop.f32.mrb[41].mxu0  ;;  %v961_v14 = vpop.f32.mrb[41].mxu1 }
 0x153   : > { %v834_v16 = vpop.f32.mrb[42].mxu0  ;;  %v962_v17 = vpop.f32.mrb[42].mxu1 }
 0x154   : > { %1027 = vst.msk [vmem:[%s1567_s17 + $0xa0] sm:$0xff] %vm1006_vm3, %v832_v11  ;;  %1059 = vst.msk [vmem:[%s1567_s17 + $0x1a0] sm:$0xff] %vm1006_vm3, %v960_v12  ;;  %v835_v18 = vadd.f32 %v1560_v15, %v834_v16  ;;  %v963_v19 = vadd.f32 %v1560_v15, %v962_v17  ;;  %v836_v20 = vpop.f32.mrb[43].mxu0  ;;  %v964_v21 = vpop.f32.mrb[43].mxu1 }
 0x156   : > { %1028 = vst.msk [vmem:[%s1567_s17 + $0xa8] sm:$0xff] %vm1006_vm3, %v835_v18  ;;  %1060 = vst.msk [vmem:[%s1567_s17 + $0x1a8] sm:$0xff] %vm1006_vm3, %v963_v19 }
 0x159   : > { %v839_v22 = vpop.f32.mrb[44].mxu0  ;;  %v967_v23 = vpop.f32.mrb[44].mxu1 }
 0x15a   : > { %v840_v24 = vadd.f32 %v1560_v15, %v839_v22  ;;  %v968_v25 = vadd.f32 %v1560_v15, %v967_v23  ;;  %v841_v26 = vpop.f32.mrb[45].mxu0  ;;  %v969_v27 = vpop.f32.mrb[45].mxu1 }
 0x15b   : > { %v842_v28 = vpop.f32.mrb[46].mxu0  ;;  %v970_v29 = vpop.f32.mrb[46].mxu1 }
 0x15c   : > { %1029 = vst.msk [vmem:[%s1567_s17 + $0xb0] sm:$0xff] %vm1006_vm3, %v840_v24  ;;  %1061 = vst.msk [vmem:[%s1567_s17 + $0x1b0] sm:$0xff] %vm1006_vm3, %v968_v25  ;;  %v843_v30 = vadd.f32 %v1560_v15, %v842_v28  ;;  %v971_v31 = vadd.f32 %v1560_v15, %v970_v29  ;;  %v844_v32 = vpop.f32.mrb[47].mxu0  ;;  %v972_v33 = vpop.f32.mrb[47].mxu1 }
 0x15e   : > { %1030 = vst.msk [vmem:[%s1567_s17 + $0xb8] sm:$0xff] %vm1006_vm3, %v843_v30  ;;  %1062 = vst.msk [vmem:[%s1567_s17 + $0x1b8] sm:$0xff] %vm1006_vm3, %v971_v31 }
 0x161   : > { %v847_v34 = vpop.f32.mrb[48].mxu0  ;;  %v975_v35 = vpop.f32.mrb[48].mxu1 }
 0x162   : > { %v848_v36 = vadd.f32 %v1560_v15, %v847_v34  ;;  %v976_v37 = vadd.f32 %v1560_v15, %v975_v35  ;;  %v849_v38 = vpop.f32.mrb[49].mxu0  ;;  %v977_v39 = vpop.f32.mrb[49].mxu1 }
 0x163   : > { %v850_v40 = vpop.f32.mrb[50].mxu0  ;;  %v978_v41 = vpop.f32.mrb[50].mxu1 }
 0x164   : > { %1031 = vst.msk [vmem:[%s1567_s17 + $0xc0] sm:$0xff] %vm1006_vm3, %v848_v36  ;;  %1063 = vst.msk [vmem:[%s1567_s17 + $0x1c0] sm:$0xff] %vm1006_vm3, %v976_v37  ;;  %v851_v42 = vadd.f32 %v1560_v15, %v850_v40  ;;  %v979_v43 = vadd.f32 %v1560_v15, %v978_v41  ;;  %v852_v44 = vpop.f32.mrb[51].mxu0  ;;  %v980_v45 = vpop.f32.mrb[51].mxu1 }
 0x166   : > { %1032 = vst.msk [vmem:[%s1567_s17 + $0xc8] sm:$0xff] %vm1006_vm3, %v851_v42  ;;  %1064 = vst.msk [vmem:[%s1567_s17 + $0x1c8] sm:$0xff] %vm1006_vm3, %v979_v43 }
 0x169   : > { %v855_v46 = vpop.f32.mrb[52].mxu0  ;;  %v983_v47 = vpop.f32.mrb[52].mxu1 }
 0x16a   : > { %v856_v48 = vadd.f32 %v1560_v15, %v855_v46  ;;  %v984_v49 = vadd.f32 %v1560_v15, %v983_v47  ;;  %v857_v50 = vpop.f32.mrb[53].mxu0  ;;  %v985_v51 = vpop.f32.mrb[53].mxu1 }
 0x16b   : > { %v858_v52 = vpop.f32.mrb[54].mxu0  ;;  %v986_v53 = vpop.f32.mrb[54].mxu1 }
 0x16c   : > { %1033 = vst.msk [vmem:[%s1567_s17 + $0xd0] sm:$0xff] %vm1006_vm3, %v856_v48  ;;  %1065 = vst.msk [vmem:[%s1567_s17 + $0x1d0] sm:$0xff] %vm1006_vm3, %v984_v49  ;;  %v859_v54 = vadd.f32 %v1560_v15, %v858_v52  ;;  %v987_v55 = vadd.f32 %v1560_v15, %v986_v53  ;;  %v860_v56 = vpop.f32.mrb[55].mxu0  ;;  %v988_v57 = vpop.f32.mrb[55].mxu1 }
 0x16e   : > { %1034 = vst.msk [vmem:[%s1567_s17 + $0xd8] sm:$0xff] %vm1006_vm3, %v859_v54  ;;  %1066 = vst.msk [vmem:[%s1567_s17 + $0x1d8] sm:$0xff] %vm1006_vm3, %v987_v55 }
 0x171   : > { %v863_v58 = vpop.f32.mrb[56].mxu0  ;;  %v991_v59 = vpop.f32.mrb[56].mxu1 }
 0x172   : > { %v864_v60 = vadd.f32 %v1560_v15, %v863_v58  ;;  %v992_v61 = vadd.f32 %v1560_v15, %v991_v59  ;;  %v865_v62 = vpop.f32.mrb[57].mxu0  ;;  %v993_v63 = vpop.f32.mrb[57].mxu1 }
 0x173   : > { %v866_v0 = vpop.f32.mrb[58].mxu0  ;;  %v994_v1 = vpop.f32.mrb[58].mxu1 }
 0x174   : > { %1035 = vst.msk [vmem:[%s1567_s17 + $0xe0] sm:$0xff] %vm1006_vm3, %v864_v60  ;;  %1067 = vst.msk [vmem:[%s1567_s17 + $0x1e0] sm:$0xff] %vm1006_vm3, %v992_v61  ;;  %v867_v2 = vadd.f32 %v1560_v15, %v866_v0  ;;  %v995_v3 = vadd.f32 %v1560_v15, %v994_v1  ;;  %v868_v4 = vpop.f32.mrb[59].mxu0  ;;  %v996_v5 = vpop.f32.mrb[59].mxu1 }
 0x176   : > { %1036 = vst.msk [vmem:[%s1567_s17 + $0xe8] sm:$0xff] %vm1006_vm3, %v867_v2  ;;  %1068 = vst.msk [vmem:[%s1567_s17 + $0x1e8] sm:$0xff] %vm1006_vm3, %v995_v3 }
 0x179   : > { %v871_v6 = vpop.f32.mrb[60].mxu0  ;;  %v999_v7 = vpop.f32.mrb[60].mxu1 }
 0x17a   : > { %v872_v8 = vadd.f32 %v1560_v15, %v871_v6  ;;  %v1000_v9 = vadd.f32 %v1560_v15, %v999_v7  ;;  %v873_v10 = vpop.f32.mrb[61].mxu0  ;;  %v1001_v11 = vpop.f32.mrb[61].mxu1 }
 0x17b   : > { %v874_v12 = vpop.f32.mrb[62].mxu0  ;;  %v1002_v13 = vpop.f32.mrb[62].mxu1 }
 0x17c   : > { %1037 = vst.msk [vmem:[%s1567_s17 + $0xf0] sm:$0xff] %vm1006_vm3, %v872_v8  ;;  %1069 = vst.msk [vmem:[%s1567_s17 + $0x1f0] sm:$0xff] %vm1006_vm3, %v1000_v9  ;;  %v875_v14 = vadd.f32 %v1560_v15, %v874_v12  ;;  %v1003_v16 = vadd.f32 %v1560_v15, %v1002_v13  ;;  %v876_v17 = vpop.f32.mrb[63].mxu0  ;;  %v1004_v18 = vpop.f32.mrb[63].mxu1 }
 0x17e   : > { %1038 = vst.msk [vmem:[%s1567_s17 + $0xf8] sm:$0xff] %vm1006_vm3, %v875_v14  ;;  %1070 = vst.msk [vmem:[%s1567_s17 + $0x1f8] sm:$0xff] %vm1006_vm3, %v1003_v16 }
 0x17f PF: > { %s13_s12 = sadd.s32 1, %s1389_s12  }
 0x180   : > { %p10_p4 = scmp.ge.s32.totalorder %s13_s12, 6  }
 0x182   :  { %12 = sbr.rel (!%p10_p4) target bundleno = 1 (0x1), region = 62 }

</bundles_post_ra>
